<compile_context>
chip_gen: v7x
topology: tpu7x:2x2x1
jax: 0.10.0
libtpu: 0.0.40
codegen_flags: <defaults>
</compile_context>

<pallas_src>
import jax
import jax.numpy as jnp
from jax.experimental import pallas as pl
from jax.experimental.pallas import tpu as pltpu


def _coord_att_kernel(x_ref, wh_ref, bh_ref, ww_ref, bw_ref,
                      w1_ref, b1_ref, w2_ref, b2_ref, w3_ref, b3_ref,
                      o_ref):
    x = x_ref[0]                                    # (C, H, W) current batch elem

    # --- Linear_h: depthwise (1,7) conv over the full width + folded BN -> (C, H)
    xh = jnp.sum(x * wh_ref[...][:, None, :], axis=2) + bh_ref[...]
    # --- Linear_w: depthwise (7,1) conv over the full height + folded BN -> (C, W)
    xw = jnp.sum(x * ww_ref[...][:, :, None], axis=1) + bw_ref[...]

    # --- conv1 (1x1, BN1 folded) + h_swish.  The 1x1 conv distributes over the
    #     concat in the reference graph, so each branch is handled separately.
    yh = jnp.dot(w1_ref[...], xh, preferred_element_type=jnp.float32) + b1_ref[...]
    yw = jnp.dot(w1_ref[...], xw, preferred_element_type=jnp.float32) + b1_ref[...]
    yh = yh * jnp.clip(yh + 3.0, 0.0, 6.0) * (1.0 / 6.0)     # h_swish
    yw = yw * jnp.clip(yw + 3.0, 0.0, 6.0) * (1.0 / 6.0)

    # --- conv2 / conv3 (1x1) + sigmoid -> per-row / per-column attention
    zh = jnp.dot(w2_ref[...], yh, preferred_element_type=jnp.float32) + b2_ref[...]
    zw = jnp.dot(w3_ref[...], yw, preferred_element_type=jnp.float32) + b3_ref[...]
    ah = 1.0 / (1.0 + jnp.exp(-zh))                 # (O, H)
    aw = 1.0 / (1.0 + jnp.exp(-zw))                 # (O, W)

    # --- out[o, i, j] = a_h[o, i] * a_w[o, j]  (the expand + multiply)
    o_ref[0] = (ah[:, :, None] * aw[:, None, :]).astype(o_ref.dtype)


def coord_att(x, params, eps=1e-5):
    """Fused CoordAtt forward. x is NCHW; spatial dims must equal the depthwise
    kernel sizes (7x7), exactly as required by the PyTorch module."""
    N, C, H, W = x.shape
    f32 = jnp.float32

    wh, ww = params["wh"], params["ww"]
    assert wh.shape == (C, W) and ww.shape == (C, H), (
        "CoordAtt needs spatial dims equal to the (1,7)/(7,1) depthwise kernels")

    # Fold inference-mode BatchNorm into the preceding conv weight / bias.
    # TODO(synk): training-mode BatchNorm (batch statistics) is not implemented.
    sh = params["bnh_gamma"] / jnp.sqrt(params["bnh_var"] + eps)
    wh_eff = (wh * sh[:, None]).astype(f32)
    bh_eff = (params["bnh_beta"] - params["bnh_mean"] * sh)[:, None].astype(f32)

    sw = params["bnw_gamma"] / jnp.sqrt(params["bnw_var"] + eps)
    ww_eff = (ww * sw[:, None]).astype(f32)
    bw_eff = (params["bnw_beta"] - params["bnw_mean"] * sw)[:, None].astype(f32)

    s1 = params["bn1_gamma"] / jnp.sqrt(params["bn1_var"] + eps)
    w1_eff = (params["w1"] * s1[:, None]).astype(f32)
    b1_eff = ((params["b1"] - params["bn1_mean"]) * s1
              + params["bn1_beta"])[:, None].astype(f32)

    w2 = params["w2"].astype(f32)
    b2 = params["b2"][:, None].astype(f32)
    w3 = params["w3"].astype(f32)
    b3 = params["b3"][:, None].astype(f32)

    M = w1_eff.shape[0]
    O = w2.shape[0]

    def wspec(shape):
        # Small weights: full-extent block, same block for every grid step.
        return pl.BlockSpec(shape, lambda n: (0, 0))

    grid_spec = pltpu.PrefetchScalarGridSpec(
        num_scalar_prefetch=0,
        grid=(N,),
        in_specs=[
            pl.BlockSpec((1, C, H, W), lambda n: (n, 0, 0, 0)),   # x
            wspec((C, W)), wspec((C, 1)),                         # wh_eff, bh_eff
            wspec((C, H)), wspec((C, 1)),                         # ww_eff, bw_eff
            wspec((M, C)), wspec((M, 1)),                         # w1_eff, b1_eff
            wspec((O, M)), wspec((O, 1)),                         # w2, b2
            wspec((O, M)), wspec((O, 1)),                         # w3, b3
        ],
        out_specs=pl.BlockSpec((1, O, H, W), lambda n: (n, 0, 0, 0)),
    )

    return pl.pallas_call(
        _coord_att_kernel,
        out_shape=jax.ShapeDtypeStruct((N, O, H, W), x.dtype),
        grid_spec=grid_spec,
        compiler_params=pltpu.CompilerParams(
            dimension_semantics=("parallel",)),
    )(x.astype(f32), wh_eff, bh_eff, ww_eff, bw_eff,
      w1_eff, b1_eff, w2, b2, w3, b3)


def _coord_att_ref(x, p, eps=1e-5):
    """Pure-jnp reference that mirrors the PyTorch graph step by step."""
    N, C, H, W = x.shape

    def bn(z, gamma, beta, mean, var):
        inv = gamma / jnp.sqrt(var + eps)
        return ((z - mean[None, :, None, None]) * inv[None, :, None, None]
                + beta[None, :, None, None])

    # Linear_h: depthwise (1,7) valid conv + BN -> (N, C, H, 1)
    xh = jnp.einsum('nchw,cw->nch', x, p["wh"])[..., None]
    xh = bn(xh, p["bnh_gamma"], p["bnh_beta"], p["bnh_mean"], p["bnh_var"])
    # Linear_w: depthwise (7,1) valid conv + BN -> (N, C, 1, W) -> permute
    xw = jnp.einsum('nchw,ch->ncw', x, p["ww"])[:, :, None, :]
    xw = bn(xw, p["bnw_gamma"], p["bnw_beta"], p["bnw_mean"], p["bnw_var"])
    xw = jnp.transpose(xw, (0, 1, 3, 2))                      # (N, C, W, 1)
    y = jnp.concatenate([xh, xw], axis=2)                     # (N, C, H+W, 1)
    # conv1 (1x1) + bn1 + h_swish
    y = jnp.einsum('mc,ncsk->nmsk', p["w1"], y) + p["b1"][None, :, None, None]
    y = bn(y, p["bn1_gamma"], p["bn1_beta"], p["bn1_mean"], p["bn1_var"])
    y = y * jnp.clip(y + 3.0, 0.0, 6.0) * (1.0 / 6.0)
    yh, yw = y[:, :, :H, :], y[:, :, H:, :]
    yw = jnp.transpose(yw, (0, 1, 3, 2))                      # (N, M, 1, W)
    ah = jax.nn.sigmoid(
        jnp.einsum('om,nmsk->nosk', p["w2"], yh) + p["b2"][None, :, None, None])
    aw = jax.nn.sigmoid(
        jnp.einsum('om,nmsk->nosk', p["w3"], yw) + p["b3"][None, :, None, None])
    ah = jnp.broadcast_to(ah, (N, ah.shape[1], H, W))
    aw = jnp.broadcast_to(aw, (N, aw.shape[1], H, W))
    return aw * ah


if __name__ == "__main__":
    key = jax.random.PRNGKey(0)
    keys = jax.random.split(key, 24)

    N, H, W = 2, 7, 7
    inp = oup = 16
    groups = 32
    mip = max(8, inp // groups)   # = 8, exactly as in the PyTorch module

    def rn(k, shape, scale=1.0):
        return jax.random.normal(k, shape, jnp.float32) * scale

    def pos(k, shape):
        return jax.random.uniform(k, shape, jnp.float32, minval=0.5, maxval=1.5)

    x = rn(keys[0], (N, inp, H, W))

    params = {
        "wh": rn(keys[1], (inp, W), 0.3),
        "bnh_gamma": pos(keys[2], (inp,)),
        "bnh_beta": rn(keys[3], (inp,), 0.1),
        "bnh_mean": rn(keys[4], (inp,), 0.1),
        "bnh_var": pos(keys[5], (inp,)),
        "ww": rn(keys[6], (inp, H), 0.3),
        "bnw_gamma": pos(keys[7], (inp,)),
        "bnw_beta": rn(keys[8], (inp,), 0.1),
        "bnw_mean": rn(keys[9], (inp,), 0.1),
        "bnw_var": pos(keys[10], (inp,)),
        "w1": rn(keys[11], (mip, inp), 0.3),
        "b1": rn(keys[12], (mip,), 0.1),
        "bn1_gamma": pos(keys[13], (mip,)),
        "bn1_beta": rn(keys[14], (mip,), 0.1),
        "bn1_mean": rn(keys[15], (mip,), 0.1),
        "bn1_var": pos(keys[16], (mip,)),
        "w2": rn(keys[17], (oup, mip), 0.3),
        "b2": rn(keys[18], (oup,), 0.1),
        "w3": rn(keys[19], (oup, mip), 0.3),
        "b3": rn(keys[20], (oup,), 0.1),
    }

    out = coord_att(x, params)
    out = jax.block_until_ready(out)

    ref = _coord_att_ref(x, params)
    assert out.shape == (N, oup, H, W) and out.dtype == x.dtype
    assert jnp.allclose(out, ref, atol=1e-4, rtol=1e-4), (
        float(jnp.max(jnp.abs(out - ref))))

    print("KERNEL_OK")
</pallas_src>

<mosaic_0001>
module attributes {stable_mosaic.version = 11 : i64} {
  func.func @_coord_att_kernel(%arg0: i32, %arg1: memref<1x16x7x7xf32, #tpu.memory_space<vmem>>, %arg2: memref<16x7xf32, #tpu.memory_space<vmem>>, %arg3: memref<16x1xf32, #tpu.memory_space<vmem>>, %arg4: memref<16x7xf32, #tpu.memory_space<vmem>>, %arg5: memref<16x1xf32, #tpu.memory_space<vmem>>, %arg6: memref<8x16xf32, #tpu.memory_space<vmem>>, %arg7: memref<8x1xf32, #tpu.memory_space<vmem>>, %arg8: memref<16x8xf32, #tpu.memory_space<vmem>>, %arg9: memref<16x1xf32, #tpu.memory_space<vmem>>, %arg10: memref<16x8xf32, #tpu.memory_space<vmem>>, %arg11: memref<16x1xf32, #tpu.memory_space<vmem>>, %arg12: memref<1x16x7x7xf32, #tpu.memory_space<vmem>>) attributes {dimension_semantics = [#tpu.dimension_semantics<parallel>], iteration_bounds = array<i64: 2>, scalar_prefetch = 0 : i64, scratch_operands = 0 : i64, tpu.core_type = #tpu.core_type<tc>, window_params = [{transform_indices = @transform_0, window_bounds = array<i64: 1, 16, 7, 7>}, {pipeline_mode = #tpu.pipeline_mode<synchronous>, transform_indices = @transform_1, window_bounds = array<i64: 16, 7>}, {pipeline_mode = #tpu.pipeline_mode<synchronous>, transform_indices = @transform_2, window_bounds = array<i64: 16, 1>}, {pipeline_mode = #tpu.pipeline_mode<synchronous>, transform_indices = @transform_3, window_bounds = array<i64: 16, 7>}, {pipeline_mode = #tpu.pipeline_mode<synchronous>, transform_indices = @transform_4, window_bounds = array<i64: 16, 1>}, {pipeline_mode = #tpu.pipeline_mode<synchronous>, transform_indices = @transform_5, window_bounds = array<i64: 8, 16>}, {pipeline_mode = #tpu.pipeline_mode<synchronous>, transform_indices = @transform_6, window_bounds = array<i64: 8, 1>}, {pipeline_mode = #tpu.pipeline_mode<synchronous>, transform_indices = @transform_7, window_bounds = array<i64: 16, 8>}, {pipeline_mode = #tpu.pipeline_mode<synchronous>, transform_indices = @transform_8, window_bounds = array<i64: 16, 1>}, {pipeline_mode = #tpu.pipeline_mode<synchronous>, transform_indices = @transform_9, window_bounds = array<i64: 16, 8>}, {pipeline_mode = #tpu.pipeline_mode<synchronous>, transform_indices = @transform_10, window_bounds = array<i64: 16, 1>}, {transform_indices = @transform_11, window_bounds = array<i64: 1, 16, 7, 7>}]} {
    %c0 = arith.constant 0 : index
    %c0_0 = arith.constant 0 : index
    %c0_1 = arith.constant 0 : index
    %c0_2 = arith.constant 0 : index
    %0 = vector.load %arg1[%c0, %c0_0, %c0_1, %c0_2] : memref<1x16x7x7xf32, #tpu.memory_space<vmem>>, vector<1x16x7x7xf32>
    %1 = vector.shape_cast %0 : vector<1x16x7x7xf32> to vector<16x7x7xf32>
    %c0_3 = arith.constant 0 : index
    %c0_4 = arith.constant 0 : index
    %2 = vector.load %arg2[%c0_3, %c0_4] : memref<16x7xf32, #tpu.memory_space<vmem>>, vector<16x7xf32>
    %3 = vector.shape_cast %2 : vector<16x7xf32> to vector<16x1x7xf32>
    %4 = vector.broadcast %3 : vector<16x1x7xf32> to vector<16x7x7xf32>
    %5 = arith.mulf %1, %4 : vector<16x7x7xf32>
    %cst = arith.constant dense<0.000000e+00> : vector<16x7xf32>
    %6 = vector.multi_reduction <add>, %5, %cst [2] : vector<16x7x7xf32> to vector<16x7xf32>
    %c0_5 = arith.constant 0 : index
    %c0_6 = arith.constant 0 : index
    %7 = vector.load %arg3[%c0_5, %c0_6] : memref<16x1xf32, #tpu.memory_space<vmem>>, vector<16x1xf32>
    %8 = vector.broadcast %7 : vector<16x1xf32> to vector<16x7xf32>
    %9 = arith.addf %6, %8 : vector<16x7xf32>
    %c0_7 = arith.constant 0 : index
    %c0_8 = arith.constant 0 : index
    %10 = vector.load %arg4[%c0_7, %c0_8] : memref<16x7xf32, #tpu.memory_space<vmem>>, vector<16x7xf32>
    %11 = vector.shape_cast %10 : vector<16x7xf32> to vector<16x7x1xf32>
    %12 = vector.broadcast %11 : vector<16x7x1xf32> to vector<16x7x7xf32>
    %13 = arith.mulf %1, %12 : vector<16x7x7xf32>
    %cst_9 = arith.constant dense<0.000000e+00> : vector<16x7xf32>
    %14 = vector.multi_reduction <add>, %13, %cst_9 [1] : vector<16x7x7xf32> to vector<16x7xf32>
    %c0_10 = arith.constant 0 : index
    %c0_11 = arith.constant 0 : index
    %15 = vector.load %arg5[%c0_10, %c0_11] : memref<16x1xf32, #tpu.memory_space<vmem>>, vector<16x1xf32>
    %16 = vector.broadcast %15 : vector<16x1xf32> to vector<16x7xf32>
    %17 = arith.addf %14, %16 : vector<16x7xf32>
    %c0_12 = arith.constant 0 : index
    %c0_13 = arith.constant 0 : index
    %18 = vector.load %arg6[%c0_12, %c0_13] : memref<8x16xf32, #tpu.memory_space<vmem>>, vector<8x16xf32>
    %cst_14 = arith.constant dense<0.000000e+00> : vector<8x7xf32>
    %19 = tpu.matmul %18, %9, %cst_14 {dimension_numbers = #tpu.dot_dimension_numbers<[1], [0], [0], [1], [0, 0, 1, 1], [], []>} : vector<8x16xf32>, vector<16x7xf32>, vector<8x7xf32> -> vector<8x7xf32>
    %c0_15 = arith.constant 0 : index
    %c0_16 = arith.constant 0 : index
    %20 = vector.load %arg7[%c0_15, %c0_16] : memref<8x1xf32, #tpu.memory_space<vmem>>, vector<8x1xf32>
    %21 = vector.broadcast %20 : vector<8x1xf32> to vector<8x7xf32>
    %22 = arith.addf %19, %21 : vector<8x7xf32>
    %c0_17 = arith.constant 0 : index
    %c0_18 = arith.constant 0 : index
    %23 = vector.load %arg6[%c0_17, %c0_18] : memref<8x16xf32, #tpu.memory_space<vmem>>, vector<8x16xf32>
    %cst_19 = arith.constant dense<0.000000e+00> : vector<8x7xf32>
    %24 = tpu.matmul %23, %17, %cst_19 {dimension_numbers = #tpu.dot_dimension_numbers<[1], [0], [0], [1], [0, 0, 1, 1], [], []>} : vector<8x16xf32>, vector<16x7xf32>, vector<8x7xf32> -> vector<8x7xf32>
    %c0_20 = arith.constant 0 : index
    %c0_21 = arith.constant 0 : index
    %25 = vector.load %arg7[%c0_20, %c0_21] : memref<8x1xf32, #tpu.memory_space<vmem>>, vector<8x1xf32>
    %26 = vector.broadcast %25 : vector<8x1xf32> to vector<8x7xf32>
    %27 = arith.addf %24, %26 : vector<8x7xf32>
    %cst_22 = arith.constant 3.000000e+00 : f32
    %28 = vector.broadcast %cst_22 : f32 to vector<8x7xf32>
    %29 = arith.addf %22, %28 : vector<8x7xf32>
    %cst_23 = arith.constant 0.000000e+00 : f32
    %cst_24 = arith.constant 6.000000e+00 : f32
    %30 = vector.broadcast %cst_23 : f32 to vector<8x7xf32>
    %31 = arith.maximumf %30, %29 : vector<8x7xf32>
    %32 = vector.broadcast %cst_24 : f32 to vector<8x7xf32>
    %33 = arith.minimumf %32, %31 : vector<8x7xf32>
    %34 = arith.mulf %22, %33 : vector<8x7xf32>
    %cst_25 = arith.constant 0.166666672 : f32
    %35 = vector.broadcast %cst_25 : f32 to vector<8x7xf32>
    %36 = arith.mulf %34, %35 : vector<8x7xf32>
    %cst_26 = arith.constant 3.000000e+00 : f32
    %37 = vector.broadcast %cst_26 : f32 to vector<8x7xf32>
    %38 = arith.addf %27, %37 : vector<8x7xf32>
    %cst_27 = arith.constant 0.000000e+00 : f32
    %cst_28 = arith.constant 6.000000e+00 : f32
    %39 = vector.broadcast %cst_27 : f32 to vector<8x7xf32>
    %40 = arith.maximumf %39, %38 : vector<8x7xf32>
    %41 = vector.broadcast %cst_28 : f32 to vector<8x7xf32>
    %42 = arith.minimumf %41, %40 : vector<8x7xf32>
    %43 = arith.mulf %27, %42 : vector<8x7xf32>
    %cst_29 = arith.constant 0.166666672 : f32
    %44 = vector.broadcast %cst_29 : f32 to vector<8x7xf32>
    %45 = arith.mulf %43, %44 : vector<8x7xf32>
    %c0_30 = arith.constant 0 : index
    %c0_31 = arith.constant 0 : index
    %46 = vector.load %arg8[%c0_30, %c0_31] : memref<16x8xf32, #tpu.memory_space<vmem>>, vector<16x8xf32>
    %cst_32 = arith.constant dense<0.000000e+00> : vector<16x7xf32>
    %47 = tpu.matmul %46, %36, %cst_32 {dimension_numbers = #tpu.dot_dimension_numbers<[1], [0], [0], [1], [0, 0, 1, 1], [], []>} : vector<16x8xf32>, vector<8x7xf32>, vector<16x7xf32> -> vector<16x7xf32>
    %c0_33 = arith.constant 0 : index
    %c0_34 = arith.constant 0 : index
    %48 = vector.load %arg9[%c0_33, %c0_34] : memref<16x1xf32, #tpu.memory_space<vmem>>, vector<16x1xf32>
    %49 = vector.broadcast %48 : vector<16x1xf32> to vector<16x7xf32>
    %50 = arith.addf %47, %49 : vector<16x7xf32>
    %c0_35 = arith.constant 0 : index
    %c0_36 = arith.constant 0 : index
    %51 = vector.load %arg10[%c0_35, %c0_36] : memref<16x8xf32, #tpu.memory_space<vmem>>, vector<16x8xf32>
    %cst_37 = arith.constant dense<0.000000e+00> : vector<16x7xf32>
    %52 = tpu.matmul %51, %45, %cst_37 {dimension_numbers = #tpu.dot_dimension_numbers<[1], [0], [0], [1], [0, 0, 1, 1], [], []>} : vector<16x8xf32>, vector<8x7xf32>, vector<16x7xf32> -> vector<16x7xf32>
    %c0_38 = arith.constant 0 : index
    %c0_39 = arith.constant 0 : index
    %53 = vector.load %arg11[%c0_38, %c0_39] : memref<16x1xf32, #tpu.memory_space<vmem>>, vector<16x1xf32>
    %54 = vector.broadcast %53 : vector<16x1xf32> to vector<16x7xf32>
    %55 = arith.addf %52, %54 : vector<16x7xf32>
    %cst_40 = arith.constant 0.000000e+00 : f32
    %56 = vector.broadcast %cst_40 : f32 to vector<16x7xf32>
    %57 = arith.subf %56, %50 : vector<16x7xf32>
    %58 = math.exp %57 : vector<16x7xf32>
    %cst_41 = arith.constant 1.000000e+00 : f32
    %59 = vector.broadcast %cst_41 : f32 to vector<16x7xf32>
    %60 = arith.addf %59, %58 : vector<16x7xf32>
    %cst_42 = arith.constant 1.000000e+00 : f32
    %61 = vector.broadcast %cst_42 : f32 to vector<16x7xf32>
    %62 = arith.divf %61, %60 : vector<16x7xf32>
    %cst_43 = arith.constant 0.000000e+00 : f32
    %63 = vector.broadcast %cst_43 : f32 to vector<16x7xf32>
    %64 = arith.subf %63, %55 : vector<16x7xf32>
    %65 = math.exp %64 : vector<16x7xf32>
    %cst_44 = arith.constant 1.000000e+00 : f32
    %66 = vector.broadcast %cst_44 : f32 to vector<16x7xf32>
    %67 = arith.addf %66, %65 : vector<16x7xf32>
    %cst_45 = arith.constant 1.000000e+00 : f32
    %68 = vector.broadcast %cst_45 : f32 to vector<16x7xf32>
    %69 = arith.divf %68, %67 : vector<16x7xf32>
    %70 = vector.shape_cast %62 : vector<16x7xf32> to vector<16x7x1xf32>
    %71 = vector.shape_cast %69 : vector<16x7xf32> to vector<16x1x7xf32>
    %72 = vector.broadcast %70 : vector<16x7x1xf32> to vector<16x7x7xf32>
    %73 = vector.broadcast %71 : vector<16x1x7xf32> to vector<16x7x7xf32>
    %74 = arith.mulf %72, %73 : vector<16x7x7xf32>
    %c0_46 = arith.constant 0 : index
    %c0_47 = arith.constant 0 : index
    %c0_48 = arith.constant 0 : index
    %c0_49 = arith.constant 0 : index
    %75 = vector.load %arg12[%c0_46, %c0_47, %c0_48, %c0_49] : memref<1x16x7x7xf32, #tpu.memory_space<vmem>>, vector<1x16x7x7xf32>
    %76 = vector.shape_cast %75 : vector<1x16x7x7xf32> to vector<16x7x7xf32>
    %77 = vector.shape_cast %74 : vector<16x7x7xf32> to vector<1x16x7x7xf32>
    tpu.vector_store %arg12[%c0_46, %c0_47, %c0_48, %c0_49], %77 {strides = array<i32>} : memref<1x16x7x7xf32, #tpu.memory_space<vmem>>, vector<1x16x7x7xf32>,
    return
  }
  func.func @transform_0(%arg0: i32) -> (i32, i32, i32, i32) {
    %c0_i32 = arith.constant 0 : i32
    %c0_i32_0 = arith.constant 0 : i32
    %c0_i32_1 = arith.constant 0 : i32
    %c0_i32_2 = arith.constant 0 : i32
    return %arg0, %c0_i32, %c0_i32_0, %c0_i32_1 : i32, i32, i32, i32
  }
  func.func @transform_1(%arg0: i32) -> (i32, i32) {
    %c0_i32 = arith.constant 0 : i32
    %c0_i32_0 = arith.constant 0 : i32
    %c0_i32_1 = arith.constant 0 : i32
    return %c0_i32, %c0_i32_0 : i32, i32
  }
  func.func @transform_2(%arg0: i32) -> (i32, i32) {
    %c0_i32 = arith.constant 0 : i32
    %c0_i32_0 = arith.constant 0 : i32
    %c0_i32_1 = arith.constant 0 : i32
    return %c0_i32, %c0_i32_0 : i32, i32
  }
  func.func @transform_3(%arg0: i32) -> (i32, i32) {
    %c0_i32 = arith.constant 0 : i32
    %c0_i32_0 = arith.constant 0 : i32
    %c0_i32_1 = arith.constant 0 : i32
    return %c0_i32, %c0_i32_0 : i32, i32
  }
  func.func @transform_4(%arg0: i32) -> (i32, i32) {
    %c0_i32 = arith.constant 0 : i32
    %c0_i32_0 = arith.constant 0 : i32
    %c0_i32_1 = arith.constant 0 : i32
    return %c0_i32, %c0_i32_0 : i32, i32
  }
  func.func @transform_5(%arg0: i32) -> (i32, i32) {
    %c0_i32 = arith.constant 0 : i32
    %c0_i32_0 = arith.constant 0 : i32
    %c0_i32_1 = arith.constant 0 : i32
    return %c0_i32, %c0_i32_0 : i32, i32
  }
  func.func @transform_6(%arg0: i32) -> (i32, i32) {
    %c0_i32 = arith.constant 0 : i32
    %c0_i32_0 = arith.constant 0 : i32
    %c0_i32_1 = arith.constant 0 : i32
    return %c0_i32, %c0_i32_0 : i32, i32
  }
  func.func @transform_7(%arg0: i32) -> (i32, i32) {
    %c0_i32 = arith.constant 0 : i32
    %c0_i32_0 = arith.constant 0 : i32
    %c0_i32_1 = arith.constant 0 : i32
    return %c0_i32, %c0_i32_0 : i32, i32
  }
  func.func @transform_8(%arg0: i32) -> (i32, i32) {
    %c0_i32 = arith.constant 0 : i32
    %c0_i32_0 = arith.constant 0 : i32
    %c0_i32_1 = arith.constant 0 : i32
    return %c0_i32, %c0_i32_0 : i32, i32
  }
  func.func @transform_9(%arg0: i32) -> (i32, i32) {
    %c0_i32 = arith.constant 0 : i32
    %c0_i32_0 = arith.constant 0 : i32
    %c0_i32_1 = arith.constant 0 : i32
    return %c0_i32, %c0_i32_0 : i32, i32
  }
  func.func @transform_10(%arg0: i32) -> (i32, i32) {
    %c0_i32 = arith.constant 0 : i32
    %c0_i32_0 = arith.constant 0 : i32
    %c0_i32_1 = arith.constant 0 : i32
    return %c0_i32, %c0_i32_0 : i32, i32
  }
  func.func @transform_11(%arg0: i32) -> (i32, i32, i32, i32) {
    %c0_i32 = arith.constant 0 : i32
    %c0_i32_0 = arith.constant 0 : i32
    %c0_i32_1 = arith.constant 0 : i32
    %c0_i32_2 = arith.constant 0 : i32
    return %arg0, %c0_i32, %c0_i32_0, %c0_i32_1 : i32, i32, i32, i32
  }
}

</mosaic_0001>

<bundles_post_ra>
// kernel: tpu_custom_call.1
= control target key start
LH: loop header
LB: loop body
LE: loop exit
PB: predicated region body
PF: predicated region fallthrough
CT: control target
= control target key end

     0   :  { %s2215_s17 = smov 0   ;;  %s2706_s0 = inlined_call_operand.vmem [shape: f32[2,16,7,7], index: 0, kind: input, shape index: {}]   ;;  %s2707_s1 = inlined_call_operand.vmem [shape: f32[16,7], index: 1, kind: input, shape index: {}]   ;;  %s2708_s2 = inlined_call_operand.vmem [shape: f32[16,1], index: 2, kind: input, shape index: {}]   ;;  %s2709_s3 = inlined_call_operand.vmem [shape: f32[16,7], index: 3, kind: input, shape index: {}]   ;;  %s2710_s4 = inlined_call_operand.vmem [shape: f32[16,1], index: 4, kind: input, shape index: {}]   ;;  %s2711_s5 = inlined_call_operand.vmem [shape: f32[8,16], index: 5, kind: input, shape index: {}]   ;;  %s2712_s6 = inlined_call_operand.vmem [shape: f32[8,1], index: 6, kind: input, shape index: {}]   ;;  %s2713_s7 = inlined_call_operand.vmem [shape: f32[16,8], index: 7, kind: input, shape index: {}]   ;;  %s2714_s8 = inlined_call_operand.vmem [shape: f32[16,1], index: 8, kind: input, shape index: {}]   ;;  %s2715_s9 = inlined_call_operand.vmem [shape: f32[16,8], index: 9, kind: input, shape index: {}]   ;;  %s2716_s10 = inlined_call_operand.vmem [shape: f32[16,1], index: 10, kind: input, shape index: {}]   ;;  %s2717_s11 = inlined_call_operand.vmem [shape: f32[2,16,7,7], index: 11, kind: output, shape index: {}]  }
   0x1 LB: > { %s2008_s18 = sadd.s32 4294967295, %s2148_s17   ;;  %p2012_p0 = scmp.ge.s32.totalorder %s2148_s17, 1  ;;  %s2148_s17 = sphi %s2215_s17, %s21_s17  }
   0x2   : > { %p337_p1 = scmp.lt.s32.totalorder %s2148_s17, 3 }
   0x4   : > { %p338_p2 = pnand %p2012_p0, %p337_p1 }
   0x5   : > { %p377_p3 = scmp.lt.s32.totalorder (!%p338_p2), %s2008_s18, 1  ;;  %v411_v0 = vlaneseq (!%p338_p2)  ;;  %v2150_v1 = vmov (!%p338_p2), 1966171168   ;;  %v404_v3 = vld [vmem:[%s2707_s1 + $0x8] sm:$0xff] (!%p338_p2)  ;;  %v403_v5 = vld [vmem:[%s2707_s1] sm:$0xff] (!%p338_p2)  ;;  %v2151_v6 = vmov (!%p338_p2), 0  }
   0x6   : > { %341 = sbr.rel (%p338_p2) target bundleno = 998 (0x3e6), region = 64  ;;  %v409_v2 = vunpack.c.l.s4 (!%p338_p2), %v2150_v1  ;;  %2083 = vset.pattern.permute.xlu1 (!%p338_p2), %v2151_v6  ;;  %2082 = vset.pattern.permute.xlu0 (!%p338_p2), %v2151_v6  ;;  %v456_v8 = vcombine.high (!%p338_p2), %v404_v3, %v404_v3  ;;  %v407_v9 = vcombine.high (!%p338_p2), %v403_v5, %v403_v5  ;;  %vm601_vm0 = vcmask (!%p338_p2), 55296  }
   0x7   : > { %v2229_v4 = vshrl.u32 (!%p338_p2), %v411_v0, 7  ;;  %vm2153_vm1 = vmmov (!%p338_p2), 0   ;;  %vm1191_vm2 = vcmask (!%p338_p2), 1041409   ;;  %vm1193_vm3 = vcmask (!%p338_p2), 1042434  }
   0x8   : > { %v410_v7 = vunpack.c.0.s8 (!%p338_p2), %v409_v2  ;;  %vm1195_vm4 = vcmask (!%p338_p2), 1043459   ;;  %vm1197_vm5 = vcmask (!%p338_p2), 1044484   ;;  %vm1199_vm6 = vcmask (!%p338_p2), 1045509  }
   0x9   : > { %v2246_v11 = vsub.s32 (!%p338_p2), 0, %v2229_v4  ;;  %vm1201_vm7 = vcmask (!%p338_p2), 1046534   ;;  %vm1203_vm8 = vcmask (!%p338_p2), 1047559   ;;  %vm1214_vm9 = vcmask (!%p338_p2), 130048  }
   0xa   : > { %v2236_v10 = vsub.s32 (!%p338_p2), %v410_v7, %v2229_v4  ;;  %vm1428_vm10 = vcmask (!%p338_p2), 64512  }
   0xc   : > { %v463_v12 = vrot.slane (!%p338_p2), %v404_v3, %v2236_v10  ;;  %v414_v13 = vrot.slane (!%p338_p2), %v403_v5, %v2236_v10  ;;  %v470_v14 = vrot.slane (!%p338_p2), %v456_v8, %v2236_v10  ;;  %v421_v15 = vrot.slane (!%p338_p2), %v407_v9, %v2236_v10 }
   0xd   : > { %s2719_s18 = smov (!%p377_p3, %s2008_s18), 1 }
   0xe   : > { %s2025_s23 = sshll.u32 %s2719_s18, 7  ;;  %v479_v17 = vrot.slane %v463_v12, %v2236_v10  ;;  %v430_v18 = vrot.slane %v414_v13, %v2236_v10  ;;  %v2258_v19 = vrot.slane %v470_v14, %v2236_v10  ;;  %v2261_v20 = vrot.slane %v421_v15, %v2236_v10 }
   0xf   : > { %s2243_s26 = scalar_lea.vmem %s2706_s0, %s2025_s23  ;;  %v471_v24 = vcombine.high %v463_v12, %v463_v12  ;;  %v422_v25 = vcombine.high %v414_v13, %v414_v13  ;;  %v472_v26 = vcombine.high %v470_v14, %v470_v14  ;;  %v423_v27 = vcombine.high %v421_v15, %v421_v15  ;;  %s2648_s29 = scalar_lea.vmem %s2717_s11, %s2025_s23 }
  0x10   : > { %v2253_v16 = vld [vmem:[%s2243_s26 + $0x40] sm:$0x7f]  ;;  %v540_v28 = vrot.slane %v479_v17, %v2246_v11  ;;  %v508_v29 = vrot.slane %v430_v18, %v2246_v11  ;;  %v556_v30 = vrot.slane %v2258_v19, %v2246_v11  ;;  %v524_v31 = vrot.slane %v2261_v20, %v2246_v11  ;;  %v2285_v40 = vld [vmem:[%s2243_s26 + $0x48] sm:$0x7f]  ;;  %v2298_v49 = vld [vmem:[%s2243_s26 + $0x50] sm:$0x7f] }
  0x11   : > { %v2264_v21 = vld [vmem:[%s2243_s26] sm:$0x7f]  ;;  %v493_v32 = vrot.slane %v471_v24, %v2236_v10  ;;  %v444_v33 = vrot.slane %v422_v25, %v2236_v10  ;;  %v501_v34 = vcombine.high %v479_v17, %v479_v17  ;;  %v452_v35 = vcombine.high %v430_v18, %v430_v18  ;;  %v2289_v42 = vld [vmem:[%s2243_s26 + $0x8] sm:$0x7f]  ;;  %v2304_v53 = vld [vmem:[%s2243_s26 + $0x10] sm:$0x7f] }
  0x12   : > { %v2267_v22 = vld [vmem:[%s2243_s26 + $0x60] sm:$0x7f]  ;;  %v593_v36 = vmul.f32 %v540_v28, %v2253_v16  ;;  %v585_v37 = vmul.f32 %v508_v29, %v2264_v21  ;;  %v500_v54 = vrot.slane %v472_v26, %v2236_v10  ;;  %v451_v55 = vrot.slane %v423_v27, %v2236_v10  ;;  %v2315_v1 = vld [vmem:[%s2243_s26 + $0x68] sm:$0x7f]  ;;  %v2327_v12 = vld [vmem:[%s2243_s26 + $0x58] sm:$0x7f] }
  0x13   : > { %v2270_v23 = vld [vmem:[%s2243_s26 + $0x20] sm:$0x7f]  ;;  %v597_v38 = vmul.f32 %v556_v30, %v2267_v22  ;;  %v544_v41 = vrot.slane %v493_v32, %v2246_v11  ;;  %v512_v43 = vrot.slane %v444_v33, %v2246_v11  ;;  %v548_v46 = vrot.slane %v501_v34, %v2246_v11  ;;  %v2318_v2 = vld [vmem:[%s2243_s26 + $0x28] sm:$0x7f]  ;;  %v2330_v13 = vld [vmem:[%s2243_s26 + $0x18] sm:$0x7f] }
  0x14   : > { %v589_v39 = vmul.f32 %v524_v31, %v2270_v23  ;;  %v626_v44 = vsel %vm601_vm0, %v593_v36, 0.0  ;;  %v602_v45 = vsel %vm601_vm0, %v585_v37, 0.0  ;;  %v516_v50 = vrot.slane %v452_v35, %v2246_v11  ;;  %v2343_v28 = vld [vmem:[%s2243_s26 + $0x70] sm:$0x7f]  ;;  %v651_v34 = vld [vmem:[%s2708_s2 + $0x8] sm:$0xff]  ;;  %v650_v35 = vld [vmem:[%s2708_s2] sm:$0xff] }
  0x15   : > { %627 = vadd.xlane.f32.xlu1 %v626_v44  ;;  %603 = vadd.xlane.f32.xlu0 %v602_v45  ;;  %v638_v47 = vsel %vm601_vm0, %v597_v38, 0.0  ;;  %v594_v51 = vmul.f32 %v544_v41, %v2285_v40  ;;  %v586_v52 = vmul.f32 %v512_v43, %v2289_v42  ;;  %v595_v56 = vmul.f32 %v548_v46, %v2298_v49  ;;  %v2363_v41 = vld [vmem:[%s2243_s26 + $0x38] sm:$0x7f] }
  0x16   : > { %v614_v48 = vsel %vm601_vm0, %v589_v39, 0.0  ;;  %v587_v57 = vmul.f32 %v516_v50, %v2304_v53  ;;  %v503_v58 = vcombine.high %v493_v32, %v493_v32  ;;  %v454_v59 = vcombine.high %v444_v33, %v444_v33  ;;  %v2366_v43 = vld [vmem:[%s2243_s26 + $0x78] sm:$0x7f] }
  0x17   : > { %v629_v60 = vsel %vm601_vm0, %v594_v51, 0.0  ;;  %v605_v61 = vsel %vm601_vm0, %v586_v52, 0.0  ;;  %v560_v62 = vrot.slane %v500_v54, %v2246_v11  ;;  %v528_v63 = vrot.slane %v451_v55, %v2246_v11 }
  0x18   : > { %v632_v3 = vsel %vm601_vm0, %v595_v56, 0.0  ;;  %v608_v5 = vsel %vm601_vm0, %v587_v57, 0.0  ;;  %v552_v6 = vrot.slane %v503_v58, %v2246_v11  ;;  %v520_v7 = vrot.slane %v454_v59, %v2246_v11 }
  0x19   : > { %639 = vadd.xlane.f32.xlu1 %v638_v47  ;;  %615 = vadd.xlane.f32.xlu0 %v614_v48  ;;  %v598_v8 = vmul.f32 %v560_v62, %v2315_v1  ;;  %v590_v9 = vmul.f32 %v528_v63, %v2318_v2  ;;  %v502_v14 = vcombine.high %v2258_v19, %v2258_v19  ;;  %v2346_v19 = vld [vmem:[%s2243_s26 + $0x30] sm:$0x7f]  ;;  %v2373_v63 = vsub.s32 3, %v2229_v4 }
  0x1a   : > { %v453_v15 = vcombine.high %v2261_v20, %v2261_v20  ;;  %v596_v17 = vmul.f32 %v552_v6, %v2327_v12  ;;  %v588_v18 = vmul.f32 %v520_v7, %v2330_v13  ;;  %v455_v36 = vcombine.high %v451_v55, %v451_v55 }
  0x1b   : > { %v641_v24 = vsel %vm601_vm0, %v598_v8, 0.0  ;;  %v617_v25 = vsel %vm601_vm0, %v590_v9, 0.0  ;;  %v564_v26 = vrot.slane %v502_v14, %v2246_v11  ;;  %v504_v37 = vcombine.high %v500_v54, %v500_v54 }
  0x1c   : > { %v532_v27 = vrot.slane %v453_v15, %v2246_v11  ;;  %v635_v20 = vsel %vm601_vm0, %v596_v17, 0.0  ;;  %v611_v29 = vsel %vm601_vm0, %v588_v18, 0.0  ;;  %v536_v38 = vrot.slane %v455_v36, %v2246_v11 }
  0x1d   : > { %630 = vadd.xlane.f32.xlu1 %v629_v60  ;;  %606 = vadd.xlane.f32.xlu0 %v605_v61  ;;  %v599_v30 = vmul.f32 %v564_v26, %v2343_v28  ;;  %v568_v39 = vrot.slane %v504_v37, %v2246_v11  ;;  %v2378_v6 = vsub.s32 1, %v2229_v4  ;;  %v2409_v37 = vsub.s32 4, %v2229_v4 }
  0x1e   : > { %v591_v31 = vmul.f32 %v532_v27, %v2346_v19  ;;  %v592_v44 = vmul.f32 %v536_v38, %v2363_v41 }
  0x1f   : > { %v644_v32 = vsel %vm601_vm0, %v599_v30, 0.0  ;;  %v600_v45 = vmul.f32 %v568_v39, %v2366_v43 }
  0x20   : > { %v620_v33 = vsel %vm601_vm0, %v591_v31, 0.0  ;;  %v623_v46 = vsel %vm601_vm0, %v592_v44, 0.0 }
  0x21   : > { %633 = vadd.xlane.f32.xlu1 %v632_v3  ;;  %609 = vadd.xlane.f32.xlu0 %v608_v5  ;;  %v647_v47 = vsel %vm601_vm0, %v600_v45, 0.0 }
  0x25   : > { %642 = vadd.xlane.f32.xlu1 %v641_v24  ;;  %618 = vadd.xlane.f32.xlu0 %v617_v25  ;;  %v2395_v24 = vsub.s32 2, %v2229_v4 }
  0x29   : > { %636 = vadd.xlane.f32.xlu1 %v635_v20  ;;  %612 = vadd.xlane.f32.xlu0 %v611_v29  ;;  %v2400_v29 = vld [vmem:[%s2709_s3 + $0x8] sm:$0xff] }
  0x2a   : > { %v831_v45 = vrot.slane %v2400_v29, %v2395_v24 }
  0x2d   : > { %645 = vadd.xlane.f32.xlu1 %v644_v32  ;;  %621 = vadd.xlane.f32.xlu0 %v620_v33 }
  0x3e   : > { %658 = vperm.xlu1 %2083, %v651_v34  }
  0x43   : > { %654 = vperm.xlu0 %2082, %v650_v35   ;;  %v824_v35 = vrot.slane %v2400_v29, %v2378_v6 }
  0x62   : > { %624 = vadd.xlane.f32.xlu1 %v623_v46  ;;  %648 = vadd.xlane.f32.xlu0 %v647_v47 }
  0xa2   : > { %v628_v48 = vpop.xlane.xlu1 %627  ;;  %v604_v50 = vpop.xlane.xlu0 %603 }
  0xa6   : > { %v640_v51 = vpop.xlane.xlu1 %639  ;;  %v616_v52 = vpop.xlane.xlu0 %615 }
  0xaa   : > { %v631_v54 = vpop.xlane.xlu1 %630  ;;  %v607_v55 = vpop.xlane.xlu0 %606 }
  0xae   : > { %v634_v56 = vpop.xlane.xlu1 %633  ;;  %v610_v57 = vpop.xlane.xlu0 %609 }
  0xb2   : > { %v643_v58 = vpop.xlane.xlu1 %642  ;;  %v619_v59 = vpop.xlane.xlu0 %618 }
  0xb6   : > { %v637_v60 = vpop.xlane.xlu1 %636  ;;  %v613_v61 = vpop.xlane.xlu0 %612 }
  0xba   : > { %v646_v62 = vpop.xlane.xlu1 %645  ;;  %v622_v3 = vpop.xlane.xlu0 %621 }
  0xbe   : > { %v2375_v5 = vpop.permute.xlu1 %658 }
  0xbf   : > { %v707_v7 = vrot.slane %v2375_v5, %v2373_v63  ;;  %v695_v9 = vrot.slane %v2375_v5, %v2246_v11  ;;  %v699_v18 = vrot.slane %v2375_v5, %v2378_v6  ;;  %v703_v36 = vrot.slane %v2375_v5, %v2395_v24 }
  0xc0   : > { %v711_v47 = vrot.slane %v2375_v5, %v2409_v37 }
  0xc1   : > { %v751_v26 = vadd.f32 %v707_v7, %v637_v60  ;;  %v748_v30 = vadd.f32 %v695_v9, %v628_v48  ;;  %v749_v33 = vadd.f32 %v699_v18, %v631_v54  ;;  %v750_v46 = vadd.f32 %v703_v36, %v634_v56 }
  0xc2   : > { %v2382_v8 = vpop.permute.xlu0 %654  ;;  %v2418_v48 = vsub.s32 5, %v2229_v4  ;;  %v752_v60 = vadd.f32 %v711_v47, %v640_v51  ;;  %v2432_v7 = vsub.s32 6, %v2229_v4  ;;  %v2154_v47 = vmov 0.0  }
  0xc3   : > { %v675_v14 = vrot.slane %v2382_v8, %v2373_v63  ;;  %v663_v15 = vrot.slane %v2382_v8, %v2246_v11  ;;  %v667_v17 = vrot.slane %v2382_v8, %v2378_v6  ;;  %v671_v34 = vrot.slane %v2382_v8, %v2395_v24  ;;  %2043 = vmatprep.mubr.msk.f32.mxu0 %vm2153_vm1, %v2154_v47 }
  0xc4   : > { %v2089_v38 = vpack.i.bf16 %v749_v33, %v748_v30  ;;  %v679_v44 = vrot.slane %v2382_v8, %v2409_v37  ;;  %v719_v51 = vrot.slane %v2375_v5, %v2432_v7  ;;  %v2447_v30 = vsub.s32 7, %v2229_v4  ;;  %v1416_v33 = vld [vmem:[%s2714_s8] sm:$0xff]  ;;  %2050 = vmatprep.mubr.msk.f32.mxu1 %vm2153_vm1, %v2154_v47 }
  0xc5   : > { %v743_v25 = vadd.f32 %v675_v14, %v613_v61  ;;  %v740_v27 = vadd.f32 %v663_v15, %v604_v50  ;;  %v741_v20 = vadd.f32 %v667_v17, %v607_v55  ;;  %v742_v39 = vadd.f32 %v671_v34, %v610_v57  ;;  %v2423_v50 = vld [vmem:[%s2709_s3] sm:$0xff] }
  0xc6   : > { %v744_v55 = vadd.f32 %v679_v44, %v616_v52  ;;  %v683_v57 = vrot.slane %v2382_v8, %v2418_v48  ;;  %v782_v56 = vrot.slane %v2423_v50, %v2373_v63  ;;  %v715_v61 = vrot.slane %v2375_v5, %v2418_v48  ;;  %v1512_v44 = vld [vmem:[%s2716_s10] sm:$0xff] }
  0xc7   : > { %v2099_v31 = vpack.i.bf16 %v751_v26, %v743_v25  ;;  %v2084_v32 = vpack.i.bf16 %v741_v20, %v740_v27  ;;  %v2094_v54 = vpack.i.bf16 %v750_v46, %v742_v39  ;;  %v687_v52 = vrot.slane %v2382_v8, %v2432_v7 }
  0xc8   : > { %v2104_v9 = vpack.i.bf16 %v752_v60, %v744_v55  ;;  %v745_v14 = vadd.f32 %v683_v57, %v619_v59  ;;  %v838_v15 = vrot.slane %v2400_v29, %v2373_v63  ;;  %v753_v17 = vadd.f32 %v715_v61, %v643_v58  ;;  %v1055_v61 = vld [vmem:[%s2712_s6] sm:$0xff] }
  0xc9   : > { %2100 = vperm.xlu0 %2082, %v2099_v31   ;;  %2085 = vperm.xlu1 %2083, %v2084_v32   ;;  %v746_v25 = vadd.f32 %v687_v52, %v622_v3  ;;  %v845_v26 = vrot.slane %v2400_v29, %v2409_v37  ;;  %v754_v59 = vadd.f32 %v719_v51, %v646_v62  ;;  %v999_v62 = vld [vmem:[%s2710_s4 + $0x8] sm:$0xff]  ;;  %v2152_v46 = vmov 0.0|0.0  }
  0xca   : > { %v2109_v18 = vpack.i.bf16 %v753_v17, %v745_v14  ;;  %v852_v20 = vrot.slane %v2400_v29, %v2418_v48  ;;  %v859_v58 = vrot.slane %v2400_v29, %v2432_v7  ;;  %v866_v3 = vrot.slane %v2400_v29, %v2447_v30  ;;  %2063 = vmatprep.subr.bf16.mxu0 %v2152_v46 }
  0xcb   : > { %v2114_v27 = vpack.i.bf16 %v754_v59, %v746_v25  ;;  %v691_v31 = vrot.slane %v2382_v8, %v2447_v30  ;;  %v723_v32 = vrot.slane %v2375_v5, %v2447_v30  ;;  %v768_v8 = vrot.slane %v2423_v50, %v2378_v6  ;;  %2066 = vmatprep.subr.bf16.mxu1 %v2152_v46 }
  0xcc   : > { %v775_v5 = vrot.slane %v2423_v50, %v2395_v24  ;;  %v789_v55 = vrot.slane %v2423_v50, %v2409_v37  ;;  %v796_v57 = vrot.slane %v2423_v50, %v2418_v48  ;;  %v810_v60 = vrot.slane %v2423_v50, %v2447_v30 }
  0xcd   : > { %826 = vbcast.lane.b32.xlu0 %v824_v35, 256  ;;  %2090 = vperm.xlu1 %2083, %v2089_v38   ;;  %v1126_v59 = vand.u32 127, %v411_v0 }
  0xd1   : > { %833 = vbcast.lane.b32.xlu0 %v831_v45, 256  ;;  %2095 = vperm.xlu1 %2083, %v2094_v54   ;;  %v761_v45 = vrot.slane %v2423_v50, %v2246_v11  ;;  %v817_v54 = vrot.slane %v2400_v29, %v2246_v11  ;;  %v998_v29 = vld [vmem:[%s2710_s4] sm:$0xff] }
  0xd5   : > { %784 = vbcast.lane.b32.xlu0 %v782_v56, 256  ;;  %2105 = vperm.xlu1 %2083, %v2104_v9   ;;  %v803_v56 = vrot.slane %v2423_v50, %v2432_v7  ;;  %v1417_v9 = vld [vmem:[%s2714_s8 + $0x8] sm:$0xff] }
  0xd6   : > { %v1513_v50 = vld [vmem:[%s2716_s10 + $0x8] sm:$0xff] }
  0xd9   : > { %840 = vbcast.lane.b32.xlu0 %v838_v15, 256  ;;  %2110 = vperm.xlu1 %2083, %v2109_v18  }
  0xdd   : > { %847 = vbcast.lane.b32.xlu0 %v845_v26, 256  ;;  %2115 = vperm.xlu1 %2083, %v2114_v27  }
  0xe1   : > { %854 = vbcast.lane.b32.xlu0 %v852_v20, 256  ;;  %v2494_v20 = vsub.s32 %v1126_v59, %v2229_v4 }
  0xe5   : > { %861 = vbcast.lane.b32.xlu0 %v859_v58, 256 }
  0xe9   : > { %868 = vbcast.lane.b32.xlu0 %v866_v3, 256 }
  0xed   : > { %1006 = vperm.xlu0 %2082, %v999_v62  }
  0xef   : > { %v625_v34 = vpop.xlane.xlu1 %624  ;;  %v649_v35 = vpop.xlane.xlu0 %648 }
  0xf0   : > { %v747_v36 = vadd.f32 %v691_v31, %v625_v34  ;;  %v755_v38 = vadd.f32 %v723_v32, %v649_v35 }
  0xf1   : > { %1420 = vperm.xlu0 %2082, %v1416_v33  }
  0xf2   : > { %v2119_v39 = vpack.i.bf16 %v755_v38, %v747_v36 }
  0xf4   : > { %2120 = vperm.xlu1 %2083, %v2119_v39  }
  0xf5   : > { %1516 = vperm.xlu0 %2082, %v1512_v44  }
  0xf8   : > { %770 = vbcast.lane.b32.xlu1 %v768_v8, 256 }
  0xfc   : > { %777 = vbcast.lane.b32.xlu1 %v775_v5, 256 }
 0x100   : > { %763 = vbcast.lane.b32.xlu1 %v761_v45, 256 }
 0x104   : > { %819 = vbcast.lane.b32.xlu1 %v817_v54, 256 }
 0x108   : > { %791 = vbcast.lane.b32.xlu1 %v789_v55, 256 }
 0x10c   : > { %798 = vbcast.lane.b32.xlu1 %v796_v57, 256 }
 0x110   : > { %805 = vbcast.lane.b32.xlu1 %v803_v56, 256 }
 0x114   : > { %812 = vbcast.lane.b32.xlu1 %v810_v60, 256 }
 0x118   : > { %1002 = vperm.xlu1 %2083, %v998_v29  }
 0x11c   : > { %1058 = vperm.xlu1 %2083, %v1055_v61  }
 0x120   : > { %1425 = vperm.xlu1 %2083, %v1417_v9  }
 0x124   : > { %1521 = vperm.xlu1 %2083, %v1513_v50  }
 0x148   : > { %v2101_v14 = vpop.permute.xlu0 %2100  ;;  %v2086_v15 = vpop.permute.xlu1 %2085 }
 0x149   : > { %v2088_v58 = vunpack.i.h.bf16 %v2086_v15  ;;  %v2087_v3 = vunpack.i.l.bf16 %v2086_v15  ;;  %v2103_v31 = vunpack.i.h.bf16 %v2101_v14  ;;  %v2102_v35 = vunpack.i.l.bf16 %v2101_v14 }
 0x14b   : > { %v1134_v0 = vrot.slane %v2088_v58, %v2494_v20  ;;  %v1130_v44 = vrot.slane %v2087_v3, %v2494_v20  ;;  %v1142_v46 = vrot.slane %v2102_v35, %v2494_v20 }
 0x14c   : > { %v827_v52 = vpop.permute.xlu0 %826  ;;  %v2091_v51 = vpop.permute.xlu1 %2090 }
 0x14d   : > { %v879_v32 = vmul.f32 %v827_v52, %v2285_v40  ;;  %v2093_v36 = vunpack.i.h.bf16 %v2091_v51  ;;  %v2092_v38 = vunpack.i.l.bf16 %v2091_v51  ;;  %v1174_v40 = vrot.slane %v2103_v31, %v2494_v20 }
 0x14f   : > { %v1166_v47 = vrot.slane %v2093_v36, %v2494_v20  ;;  %v1162_v54 = vrot.slane %v2092_v38, %v2494_v20 }
 0x150   : > { %v834_v17 = vpop.permute.xlu0 %833  ;;  %v2096_v25 = vpop.permute.xlu1 %2095 }
 0x151   : > { %v880_v33 = vmul.f32 %v834_v17, %v2298_v49  ;;  %v2097_v39 = vunpack.i.l.bf16 %v2096_v25  ;;  %v2098_v4 = vunpack.i.h.bf16 %v2096_v25  ;;  %v949_v49 = vsel %vm601_vm0, %v879_v32, 0.0 }
 0x153   : > { %v956_v5 = vsel %vm601_vm0, %v880_v33, 0.0  ;;  %v1138_v55 = vrot.slane %v2097_v39, %v2494_v20  ;;  %v1170_v56 = vrot.slane %v2098_v4, %v2494_v20 }
 0x154   : > { %v785_v18 = vpop.permute.xlu0 %784  ;;  %v2106_v27 = vpop.permute.xlu1 %2105  ;;  %v957_v9 = vrot.slane %v956_v5, 4 }
 0x155   : > { %v873_v8 = vmul.f32 %v785_v18, %v2330_v13  ;;  %v1192_v13 = vsel %vm1191_vm2, %v1134_v0, %v1130_v44  ;;  %v2107_v60 = vunpack.i.l.bf16 %v2106_v27  ;;  %v2108_v50 = vunpack.i.h.bf16 %v2106_v27 }
 0x156   : > { %v1205_v18 = vsel %vm1191_vm2, %v1166_v47, %v1162_v54  ;;  %v1194_v25 = vsel %vm1193_vm3, %v1138_v55, %v1192_v13  ;;  %v958_v31 = vadd.f32 %v957_v9, %v956_v5 }
 0x157   : > { %v907_v14 = vsel %vm601_vm0, %v873_v8, 0.0  ;;  %v1146_v58 = vrot.slane %v2107_v60, %v2494_v20  ;;  %v1178_v32 = vrot.slane %v2108_v50, %v2494_v20 }
 0x158   : > { %v841_v26 = vpop.permute.xlu0 %840  ;;  %v2111_v34 = vpop.permute.xlu1 %2110  ;;  %v908_v27 = vrot.slane %v907_v14, 4 }
 0x159   : > { %v881_v45 = vmul.f32 %v841_v26, %v2327_v12  ;;  %v950_v12 = vrot.slane %v949_v49, 4  ;;  %v2113_v52 = vunpack.i.h.bf16 %v2111_v34  ;;  %v2112_v15 = vunpack.i.l.bf16 %v2111_v34 }
 0x15a   : > { %v909_v5 = vadd.f32 %v908_v27, %v907_v14  ;;  %v959_v14 = vrot.slane %v958_v31, 2  ;;  %v2544_v27 = vld [vmem:[%s2711_s5] sm:$0xff] }
 0x15b   : > { %v963_v17 = vsel %vm601_vm0, %v881_v45, 0.0  ;;  %v1182_v34 = vrot.slane %v2113_v52, %v2494_v20  ;;  %v1150_v35 = vrot.slane %v2112_v15, %v2494_v20 }
 0x15c   : > { %v848_v62 = vpop.permute.xlu0 %847  ;;  %v2116_v29 = vpop.permute.xlu1 %2115  ;;  %v964_v33 = vrot.slane %v963_v17, 4  ;;  %v910_v52 = vrot.slane %v909_v5, 2 }
 0x15d   : > { %v882_v61 = vmul.f32 %v848_v62, %v2267_v22  ;;  %v2118_v26 = vunpack.i.h.bf16 %v2116_v29  ;;  %v2117_v59 = vunpack.i.l.bf16 %v2116_v29  ;;  %v1206_v22 = vsel %vm1193_vm3, %v1170_v56, %v1205_v18 }
 0x15e   : > { %v951_v62 = vadd.f32 %v950_v12, %v949_v49  ;;  %v1207_v39 = vsel %vm1195_vm4, %v1174_v40, %v1206_v22  ;;  %v965_v54 = vadd.f32 %v964_v33, %v963_v17 }
 0x15f   : > { %v970_v3 = vsel %vm601_vm0, %v882_v61, 0.0  ;;  %v1186_v0 = vrot.slane %v2118_v26, %v2494_v20  ;;  %v1154_v44 = vrot.slane %v2117_v59, %v2494_v20  ;;  %v1208_v47 = vsel %vm1197_vm5, %v1178_v32, %v1207_v39 }
 0x160   : > { %v855_v57 = vpop.permute.xlu0 %854  ;;  %v971_v4 = vrot.slane %v970_v3, 4  ;;  %v1209_v60 = vsel %vm1199_vm6, %v1182_v34, %v1208_v47  ;;  %v952_v29 = vrot.slane %v951_v62, 2  ;;  %v966_v17 = vrot.slane %v965_v54, 2 }
 0x161   : > { %v883_v51 = vmul.f32 %v855_v57, %v2315_v1  ;;  %v1196_v1 = vsel %vm1195_vm4, %v1142_v46, %v1194_v25  ;;  %v1210_v50 = vsel %vm1201_vm7, %v1186_v0, %v1209_v60 }
 0x162   : > { %v1198_v49 = vsel %vm1197_vm5, %v1146_v58, %v1196_v1  ;;  %v972_v61 = vadd.f32 %v971_v4, %v970_v3  ;;  %v953_v26 = vadd.f32 %v952_v29, %v951_v62  ;;  %v960_v3 = vadd.f32 %v959_v14, %v958_v31 }
 0x163   : > { %v977_v36 = vsel %vm601_vm0, %v883_v51, 0.0  ;;  %v1200_v56 = vsel %vm1199_vm6, %v1150_v35, %v1198_v49  ;;  %v911_v1 = vadd.f32 %v910_v52, %v909_v5  ;;  %v967_v34 = vadd.f32 %v966_v17, %v965_v54 }
 0x164   : > { %v862_v38 = vpop.permute.xlu0 %861  ;;  %v978_v55 = vrot.slane %v977_v36, 4  ;;  %v1202_v9 = vsel %vm1201_vm7, %v1154_v44, %v1200_v56  ;;  %v973_v59 = vrot.slane %v972_v61, 2  ;;  %v961_v44 = vrot.slane %v960_v3, 1 }
 0x165   : > { %v884_v57 = vmul.f32 %v862_v38, %v2343_v28 }
 0x166   : > { %v979_v51 = vadd.f32 %v978_v55, %v977_v36  ;;  %v974_v36 = vadd.f32 %v973_v59, %v972_v61 }
 0x168   : > { %v869_v25 = vpop.permute.xlu0 %868  ;;  %v980_v35 = vrot.slane %v979_v51, 2  ;;  %v975_v55 = vrot.slane %v974_v36, 1 }
 0x169   : > { %v885_v62 = vmul.f32 %v869_v25, %v2366_v43 }
 0x16a   : > { %v981_v49 = vadd.f32 %v980_v35, %v979_v51 }
 0x16b   : > { %v991_v5 = vsel %vm601_vm0, %v885_v62, 0.0 }
 0x16c   : > { %v2554_v43 = vpop.permute.xlu0 %1006  ;;  %v992_v60 = vrot.slane %v991_v5, 4 }
 0x16d   : > { %v1016_v17 = vrot.slane %v2554_v43, 2  ;;  %v1018_v59 = vrot.slane %v2554_v43, 4 }
 0x173   : > { %v2121_v8 = vpop.permute.xlu1 %2120 }
 0x174   : > { %v2123_v45 = vunpack.i.h.bf16 %v2121_v8  ;;  %v2122_v46 = vunpack.i.l.bf16 %v2121_v8  ;;  %v968_v8 = vrot.slane %v967_v34, 1 }
 0x176   : > { %v1190_v13 = vrot.slane %v2123_v45, %v2494_v20  ;;  %v1158_v40 = vrot.slane %v2122_v46, %v2494_v20  ;;  %v984_v20 = vsel %vm601_vm0, %v884_v57, 0.0  ;;  %v969_v61 = vadd.f32 %v968_v8, %v967_v34 }
 0x177   : > { %v771_v12 = vpop.permute.xlu1 %770  ;;  %v985_v32 = vrot.slane %v984_v20, 4 }
 0x178   : > { %v1204_v15 = vsel %vm1203_vm8, %v1158_v40, %v1202_v9  ;;  %v1211_v28 = vsel %vm1203_vm8, %v1190_v13, %v1210_v50  ;;  %v871_v22 = vmul.f32 %v771_v12, %v2289_v42  ;;  %v954_v42 = vrot.slane %v953_v26, 1 }
 0x179   : > { %v2064_v18 = vpack.c.bf16 %v1211_v28, %v1204_v15  ;;  %v986_v31 = vadd.f32 %v985_v32, %v984_v20  ;;  %v962_v40 = vadd.f32 %v961_v44, %v960_v3  ;;  %v982_v12 = vrot.slane %v981_v49, 1 }
 0x17a   : > { %v893_v38 = vsel %vm601_vm0, %v871_v22, 0.0  ;;  %v955_v54 = vadd.f32 %v954_v42, %v953_v26  ;;  %v1015_v9 = vrot.slane %v2554_v43, 1  ;;  %v976_v28 = vadd.f32 %v975_v55, %v974_v36 }
 0x17b   : > { %v778_v58 = vpop.permute.xlu1 %777  ;;  %2065 = vmatpush3.bf16.msra.mxu0 %v2064_v18  ;;  %v894_v45 = vrot.slane %v893_v38, 4  ;;  %v987_v56 = vrot.slane %v986_v31, 2  ;;  %v1017_v18 = vrot.slane %v2554_v43, 3  ;;  %v983_v22 = vadd.f32 %v982_v12, %v981_v49 }
 0x17c   : > { %v872_v33 = vmul.f32 %v778_v58, %v2304_v53  ;;  %v912_v53 = vrot.slane %v911_v1, 1  ;;  %v1047_v3 = vadd.f32 %v1015_v9, %v955_v54  ;;  %v1019_v32 = vrot.slane %v2554_v43, 5 }
 0x17d   : > { %v895_v50 = vadd.f32 %v894_v45, %v893_v38  ;;  %v988_v25 = vadd.f32 %v987_v56, %v986_v31  ;;  %v1020_v38 = vrot.slane %v2554_v43, 6  ;;  %v1048_v31 = vadd.f32 %v1016_v17, %v962_v40 }
 0x17e   : > { %2044 = vmatmul.mubr.msk.f32.vlgmr.msra.gmra.mrb[0].mxu0 %vm1214_vm9, %v2544_v27  ;;  %v900_v39 = vsel %vm601_vm0, %v872_v33, 0.0  ;;  %v2558_v29 = vadd.f32 %v912_v53, %v911_v1  ;;  %v1049_v8 = vadd.f32 %v1017_v18, %v969_v61  ;;  %v2571_v49 = vadd.f32 %v1018_v59, %v976_v28 }
 0x17f   : > { %v764_v0 = vpop.permute.xlu1 %763  ;;  %v901_v46 = vrot.slane %v900_v39, 4  ;;  %v896_v33 = vrot.slane %v895_v50, 2  ;;  %v1318_v55 = vrot.slane %v1047_v3, 7  ;;  %v1320_v40 = vrot.slane %v1048_v31, 6 }
 0x180   : > { %v870_v4 = vmul.f32 %v764_v0, %v2264_v21  ;;  %v1324_v59 = vrot.slane %v2571_v49, 4 }
 0x181   : > { %v902_v14 = vadd.f32 %v901_v46, %v900_v39  ;;  %v1021_v39 = vrot.slane %v2554_v43, 7 }
 0x182   : > { %v886_v47 = vsel %vm601_vm0, %v870_v4, 0.0 }
 0x183   : > { %v887_v57 = vrot.slane %v886_v47, 4  ;;  %v820_v13 = vpop.permute.xlu1 %819  ;;  %v903_v1 = vrot.slane %v902_v14, 2 }
 0x184   : > { %v878_v21 = vmul.f32 %v820_v13, %v2253_v16  ;;  %v993_v16 = vadd.f32 %v992_v60, %v991_v5  ;;  %v897_v5 = vadd.f32 %v896_v33, %v895_v50 }
 0x185   : > { %v888_v52 = vadd.f32 %v887_v57, %v886_v47  ;;  %v904_v45 = vadd.f32 %v903_v1, %v902_v14 }
 0x186   : > { %v942_v15 = vsel %vm601_vm0, %v878_v21, 0.0  ;;  %v994_v0 = vrot.slane %v993_v16, 2  ;;  %v898_v50 = vrot.slane %v897_v5, 1 }
 0x187   : > { %v943_v51 = vrot.slane %v942_v15, 4  ;;  %v792_v20 = vpop.permute.xlu1 %791  ;;  %v889_v34 = vrot.slane %v888_v52, 2  ;;  %v905_v14 = vrot.slane %v904_v45, 1 }
 0x188   : > { %v874_v26 = vmul.f32 %v792_v20, %v2270_v23  ;;  %v989_v23 = vrot.slane %v988_v25, 1  ;;  %v995_v12 = vadd.f32 %v994_v0, %v993_v16  ;;  %v899_v33 = vadd.f32 %v898_v50, %v897_v5 }
 0x189   : > { %v944_v58 = vadd.f32 %v943_v51, %v942_v15  ;;  %v890_v46 = vadd.f32 %v889_v34, %v888_v52  ;;  %v906_v1 = vadd.f32 %v905_v14, %v904_v45 }
 0x18a   : > { %v914_v35 = vsel %vm601_vm0, %v874_v26, 0.0  ;;  %v990_v60 = vadd.f32 %v989_v23, %v988_v25  ;;  %v1322_v25 = vrot.slane %v1049_v8, 5 }
 0x18b   : > { %v945_v62 = vrot.slane %v944_v58, 2  ;;  %v915_v42 = vrot.slane %v914_v35, 4  ;;  %v799_v36 = vpop.permute.xlu1 %798  ;;  %v891_v52 = vrot.slane %v890_v46, 1 }
 0x18c   : > { %v875_v44 = vmul.f32 %v799_v36, %v2318_v2  ;;  %v2575_v2 = vadd.f32 %v1019_v32, %v983_v22  ;;  %v996_v22 = vrot.slane %v995_v12, 1 }
 0x18d   : > { %v946_v4 = vadd.f32 %v945_v62, %v944_v58  ;;  %v916_v53 = vadd.f32 %v915_v42, %v914_v35  ;;  %v892_v34 = vadd.f32 %v891_v52, %v890_v46 }
 0x18e   : > { %v921_v47 = vsel %vm601_vm0, %v875_v44, 0.0  ;;  %v1326_v16 = vrot.slane %v2575_v2, 3 }
 0x18f   : > { %v947_v54 = vrot.slane %v946_v4, 1  ;;  %v917_v57 = vrot.slane %v916_v53, 2  ;;  %v922_v13 = vrot.slane %v921_v47, 4  ;;  %v806_v56 = vpop.permute.xlu1 %805 }
 0x190   : > { %v876_v21 = vmul.f32 %v806_v56, %v2346_v19 }
 0x191   : > { %v948_v61 = vadd.f32 %v947_v54, %v946_v4  ;;  %v918_v9 = vadd.f32 %v917_v57, %v916_v53  ;;  %v923_v15 = vadd.f32 %v922_v13, %v921_v47  ;;  %v997_v54 = vadd.f32 %v996_v22, %v995_v12 }
 0x192   : > { %v928_v28 = vsel %vm601_vm0, %v876_v21, 0.0  ;;  %v1052_v12 = vadd.f32 %v1020_v38, %v990_v60 }
 0x193   : > { %v1046_v17 = vadd.f32 %v2554_v43, %v948_v61  ;;  %v924_v51 = vrot.slane %v923_v15, 2  ;;  %v929_v20 = vrot.slane %v928_v28, 4  ;;  %v813_v18 = vpop.permute.xlu1 %812  ;;  %v919_v26 = vrot.slane %v918_v9, 1 }
 0x194   : > { %v877_v19 = vmul.f32 %v813_v18, %v2363_v41 }
 0x195   : > { %v1319_v58 = vsel %vm1191_vm2, %v1318_v55, %v1046_v17  ;;  %v925_v3 = vadd.f32 %v924_v51, %v923_v15  ;;  %v930_v32 = vadd.f32 %v929_v20, %v928_v28  ;;  %v920_v0 = vadd.f32 %v919_v26, %v918_v9 }
 0x196   : > { %v935_v35 = vsel %vm601_vm0, %v877_v19, 0.0  ;;  %v1321_v41 = vsel %vm1193_vm3, %v1320_v40, %v1319_v58  ;;  %v1053_v26 = vadd.f32 %v1021_v39, %v997_v54 }
 0x197   : > { %v926_v62 = vrot.slane %v925_v3, 1  ;;  %v931_v42 = vrot.slane %v930_v32, 2  ;;  %v936_v36 = vrot.slane %v935_v35, 4  ;;  %v1003_v23 = vpop.permute.xlu1 %1002  ;;  %v1323_v46 = vsel %vm1195_vm4, %v1322_v25, %v1321_v41 }
 0x198   : > { %v1008_v44 = vrot.slane %v1003_v23, 1  ;;  %v1009_v31 = vrot.slane %v1003_v23, 2  ;;  %v1010_v4 = vrot.slane %v1003_v23, 3  ;;  %v1011_v47 = vrot.slane %v1003_v23, 4 }
 0x199   : > { %v927_v53 = vadd.f32 %v926_v62, %v925_v3  ;;  %v932_v8 = vadd.f32 %v931_v42, %v930_v32  ;;  %v937_v49 = vadd.f32 %v936_v36, %v935_v35  ;;  %v1012_v5 = vrot.slane %v1003_v23, 5  ;;  %v1510_v36 = vld [vmem:[%s2715_s9] sm:$0xff] }
 0x19a   : > { %v1039_v45 = vadd.f32 %v1008_v44, %v899_v33  ;;  %v1040_v13 = vadd.f32 %v1009_v31, %v906_v1  ;;  %v1041_v56 = vadd.f32 %v1010_v4, %v2558_v29  ;;  %v1038_v21 = vadd.f32 %v1003_v23, %v892_v34 }
 0x19b   : > { %v933_v55 = vrot.slane %v932_v8, 1  ;;  %v938_v57 = vrot.slane %v937_v49, 2  ;;  %v1013_v2 = vrot.slane %v1003_v23, 6  ;;  %v1042_v40 = vadd.f32 %v1011_v47, %v920_v0 }
 0x19c   : > { %v1304_v61 = vrot.slane %v1039_v45, 7  ;;  %v1043_v50 = vadd.f32 %v1012_v5, %v927_v53  ;;  %v1306_v14 = vrot.slane %v1040_v13, 6  ;;  %v1308_v28 = vrot.slane %v1041_v56, 5  ;;  %v1511_v56 = vld [vmem:[%s2715_s9 + $0x8] sm:$0xff] }
 0x19d   : > { %v934_v9 = vadd.f32 %v933_v55, %v932_v8  ;;  %v939_v15 = vadd.f32 %v938_v57, %v937_v49  ;;  %v1325_v17 = vsel %vm1197_vm5, %v1324_v59, %v1323_v46  ;;  %v1310_v18 = vrot.slane %v1042_v40, 4  ;;  %v1415_v49 = vld [vmem:[%s2713_s7 + $0x8] sm:$0xff]  ;;  %v1421_v40 = vpop.permute.xlu0 %1420 }
 0x19e   : > { %v1305_v52 = vsel %vm1191_vm2, %v1304_v61, %v1038_v21  ;;  %v1014_v25 = vrot.slane %v1003_v23, 7  ;;  %v1312_v38 = vrot.slane %v1043_v50, 3  ;;  %v1327_v60 = vsel %vm1199_vm6, %v1326_v16, %v1325_v17  ;;  %v1414_v16 = vld [vmem:[%s2713_s7] sm:$0xff]  ;;  %v1059_v23 = vpop.permute.xlu1 %1058 }
 0x19f   : > { %v940_v51 = vrot.slane %v939_v15, 1  ;;  %v1044_v20 = vadd.f32 %v1013_v2, %v934_v9  ;;  %v1307_v29 = vsel %vm1193_vm3, %v1306_v14, %v1305_v52  ;;  %v1328_v32 = vrot.slane %v1052_v12, 2  ;;  %2055 = vmatprep.mubr.msk.f32.mxu0 %vm1428_vm10, %v1414_v16 }
 0x1a0   : > { %v1309_v19 = vsel %vm1195_vm4, %v1308_v28, %v1307_v29  ;;  %v1330_v35 = vrot.slane %v1053_v26, 1 }
 0x1a1   : > { %v941_v22 = vadd.f32 %v940_v51, %v939_v15  ;;  %v1311_v58 = vsel %vm1197_vm5, %v1310_v18, %v1309_v19  ;;  %v1314_v3 = vrot.slane %v1044_v20, 2  ;;  %v1329_v1 = vsel %vm1201_vm7, %v1328_v32, %v1327_v60  ;;  %v1517_v16 = vpop.permute.xlu0 %1516 }
 0x1a2   : > { %v1313_v33 = vsel %vm1199_vm6, %v1312_v38, %v1311_v58  ;;  %v1331_v62 = vsel %vm1203_vm8, %v1330_v35, %v1329_v1  ;;  %v1426_v21 = vpop.permute.xlu1 %1425 }
 0x1a3   : > { %v1045_v59 = vadd.f32 %v1014_v25, %v941_v22  ;;  %v1315_v43 = vsel %vm1201_vm7, %v1314_v3, %v1313_v33 }
 0x1a5   : > { %v1316_v34 = vrot.slane %v1045_v59, 1 }
 0x1a7   : > { %v1317_v39 = vsel %vm1203_vm8, %v1316_v34, %v1315_v43 }
 0x1a8   : > { %v2067_v42 = vpack.c.bf16 %v1331_v62, %v1317_v39 }
 0x1aa   : > { %2068 = vmatpush3.bf16.msra.mxu1 %v2067_v42 }
 0x1ad   : > { %2051 = vmatmul.mubr.msk.f32.vlgmr.msra.gmra.mrb[0].mxu1 %vm1214_vm9, %v2544_v27 }
 0x1ae   : > { %2060 = vmatprep.mubr.msk.f32.mxu1 %vm1428_vm10, %v1510_v36 }
 0x251   : > { %v1284_v41 = vpop.f32.mrb[0].mxu0 }
 0x252   : > { %v1285_v0 = vadd.f32 %v1284_v41, %v1059_v23  ;;  %v2045_v44 = vpop.f32.mrb[1].mxu0 }
 0x254   : > { %v1404_v31 = vadd.f32 3.0, %v1285_v0 }
 0x256   : > { %v1405_v4 = vmax.f32 %v1404_v31, 0.0 }
 0x258   : > { %v1406_v27 = vmin.f32 %v1405_v4, 6.0 }
 0x25a   : > { %v1407_v53 = vmul.f32 %v1406_v27, %v1285_v0 }
 0x25c   : > { %v1408_v8 = vmul.f32 0.16666667, %v1407_v53 }
 0x25e   : > { %2053 = vmatprep.subr.mxu0 %v1408_v8 }
 0x25f   : > { %2054 = vmatpush3.msra.mxu0 %v1408_v8 }
 0x260   : > { %2056 = vmatmul.mubr.msk.f32.vlgmr.msra.gmra.mrb[2].mxu0 %vm1428_vm10, %v1415_v49 }
 0x280   : > { %v1400_v47 = vpop.f32.mrb[0].mxu1 }
 0x281   : > { %v1401_v54 = vadd.f32 %v1400_v47, %v1059_v23  ;;  %v2052_v5 = vpop.f32.mrb[1].mxu1 }
 0x283   : > { %v1409_v45 = vadd.f32 3.0, %v1401_v54 }
 0x285   : > { %v1410_v46 = vmax.f32 %v1409_v45, 0.0 }
 0x287   : > { %v1411_v55 = vmin.f32 %v1410_v46, 6.0 }
 0x289   : > { %v1412_v57 = vmul.f32 %v1411_v55, %v1401_v54 }
 0x28b   : > { %v1413_v13 = vmul.f32 0.16666667, %v1412_v57 }
 0x28d   : > { %2058 = vmatprep.subr.mxu1 %v1413_v13 }
 0x28e   : > { %2059 = vmatpush3.msra.mxu1 %v1413_v13 }
 0x28f   : > { %2061 = vmatmul.mubr.msk.f32.vlgmr.msra.gmra.mrb[2].mxu1 %vm1428_vm10, %v1511_v56 }
 0x333   : > { %v2057_v2 = vpop.f32.mrb[2].mxu0 }
 0x334   : > { %v1507_v61 = vadd.f32 %v2057_v2, %v1426_v21  ;;  %v1501_v9 = vpop.f32.mrb[3].mxu0 }
 0x335   : > { %v1502_v15 = vadd.f32 %v1501_v9, %v1421_v40 }
 0x336   : > { %v1606_v50 = vsub.f32 0.0, %v1507_v61 }
 0x337   : > { %v1605_v12 = vsub.f32 0.0, %v1502_v15 }
 0x338   : > { %v1609_v14 = vmul.f32 1.442695, %v1606_v50 }
 0x339   : > { %v1607_v52 = vmul.f32 1.442695, %v1605_v12 }
 0x33a   : > { %2126 = vpow2.f32 %v1609_v14 }
 0x33b   : > { %2128 = vpow2.f32 %v1607_v52 }
 0x344   : > { %v2127_v28 = vpop.eup %2126 }
 0x345   : > { %v1612_v17 = vadd.f32 1.0, %v2127_v28  ;;  %v2129_v51 = vpop.eup %2128 }
 0x346   : > { %v1611_v20 = vadd.f32 1.0, %v2129_v51 }
 0x347   : > { %2130 = vrcp.f32 %v1612_v17 }
 0x348   : > { %2132 = vrcp.f32 %v1611_v20 }
 0x351   : > { %v2131_v29 = vpop.eup %2130 }
 0x352   : > { %v1695_v18 = vrot.slane %v2131_v29, %v2378_v6  ;;  %v1688_v25 = vrot.slane %v2131_v29, %v2246_v11  ;;  %v1709_v26 = vrot.slane %v2131_v29, %v2373_v63  ;;  %v1702_v19 = vrot.slane %v2131_v29, %v2395_v24  ;;  %v2133_v38 = vpop.eup %2132 }
 0x353   : > { %v1723_v22 = vrot.slane %v2131_v29, %v2418_v48  ;;  %v1716_v58 = vrot.slane %v2131_v29, %v2409_v37  ;;  %v1639_v60 = vrot.slane %v2133_v38, %v2378_v6  ;;  %v1632_v3 = vrot.slane %v2133_v38, %v2246_v11 }
 0x354   : > { %1697 = vbcast.lane.b32.xlu1 %v1695_v18, 256  ;;  %1690 = vbcast.lane.b32.xlu0 %v1688_v25, 256  ;;  %v1653_v59 = vrot.slane %v2133_v38, %v2373_v63  ;;  %v1646_v33 = vrot.slane %v2133_v38, %v2395_v24  ;;  %v1667_v34 = vrot.slane %v2133_v38, %v2418_v48  ;;  %v1522_v24 = vpop.permute.xlu1 %1521 }
 0x355   : > { %v1660_v35 = vrot.slane %v2133_v38, %v2409_v37  ;;  %v1681_v6 = vrot.slane %v2133_v38, %v2447_v30  ;;  %v1674_v43 = vrot.slane %v2133_v38, %v2432_v7  ;;  %v1737_v39 = vrot.slane %v2131_v29, %v2447_v30 }
 0x356   : > { %v1730_v63 = vrot.slane %v2131_v29, %v2432_v7 }
 0x358   : > { %1711 = vbcast.lane.b32.xlu1 %v1709_v26, 256  ;;  %1704 = vbcast.lane.b32.xlu0 %v1702_v19, 256 }
 0x35c   : > { %1725 = vbcast.lane.b32.xlu1 %v1723_v22, 256  ;;  %1718 = vbcast.lane.b32.xlu0 %v1716_v58, 256 }
 0x360   : > { %1641 = vbcast.lane.b32.xlu1 %v1639_v60, 256  ;;  %1634 = vbcast.lane.b32.xlu0 %v1632_v3, 256 }
 0x362   : > { %v2062_v32 = vpop.f32.mrb[2].mxu1 }
 0x363   : > { %v1596_v1 = vpop.f32.mrb[3].mxu1  ;;  %v1602_v62 = vadd.f32 %v2062_v32, %v1522_v24 }
 0x364   : > { %1655 = vbcast.lane.b32.xlu1 %v1653_v59, 256  ;;  %1648 = vbcast.lane.b32.xlu0 %v1646_v33, 256  ;;  %v1597_v37 = vadd.f32 %v1596_v1, %v1517_v16 }
 0x365   : > { %v1618_v42 = vsub.f32 0.0, %v1602_v62 }
 0x366   : > { %v1617_v36 = vsub.f32 0.0, %v1597_v37 }
 0x367   : > { %v1621_v48 = vmul.f32 1.442695, %v1618_v42 }
 0x368   : > { %1669 = vbcast.lane.b32.xlu1 %v1667_v34, 256  ;;  %1662 = vbcast.lane.b32.xlu0 %v1660_v35, 256  ;;  %v1619_v23 = vmul.f32 1.442695, %v1617_v36 }
 0x369   : > { %2134 = vpow2.f32 %v1621_v48 }
 0x36a   : > { %2136 = vpow2.f32 %v1619_v23 }
 0x36c   : > { %1683 = vbcast.lane.b32.xlu1 %v1681_v6, 256  ;;  %1676 = vbcast.lane.b32.xlu0 %v1674_v43, 256 }
 0x370   : > { %1739 = vbcast.lane.b32.xlu1 %v1737_v39, 256  ;;  %1732 = vbcast.lane.b32.xlu0 %v1730_v63, 256 }
 0x373   : > { %v2135_v41 = vpop.eup %2134 }
 0x374   : > { %v1624_v0 = vadd.f32 1.0, %v2135_v41  ;;  %v2137_v44 = vpop.eup %2136 }
 0x375   : > { %v1623_v31 = vadd.f32 1.0, %v2137_v44 }
 0x376   : > { %2138 = vrcp.f32 %v1624_v0 }
 0x377   : > { %2140 = vrcp.f32 %v1623_v31 }
 0x380   : > { %v2139_v30 = vpop.eup %2138 }
 0x381   : > { %v1799_v7 = vrot.slane %v2139_v30, %v2236_v10  ;;  %v1792_v27 = vcombine.high %v2139_v30, %v2139_v30  ;;  %v2141_v8 = vpop.eup %2140 }
 0x382   : > { %v1750_v5 = vrot.slane %v2141_v8, %v2236_v10  ;;  %v1743_v61 = vcombine.high %v2141_v8, %v2141_v8 }
 0x383   : > { %v1807_v4 = vcombine.high %v1799_v7, %v1799_v7  ;;  %v1815_v53 = vrot.slane %v1799_v7, %v2236_v10  ;;  %v1806_v47 = vrot.slane %v1792_v27, %v2236_v10 }
 0x384   : > { %v1758_v40 = vcombine.high %v1750_v5, %v1750_v5  ;;  %v1766_v51 = vrot.slane %v1750_v5, %v2236_v10  ;;  %v1757_v25 = vrot.slane %v1743_v61, %v2236_v10 }
 0x385   : > { %v1829_v49 = vrot.slane %v1807_v4, %v2236_v10  ;;  %v1876_v54 = vrot.slane %v1815_v53, %v2246_v11  ;;  %v1837_v55 = vcombine.high %v1815_v53, %v1815_v53  ;;  %v1808_v57 = vcombine.high %v1806_v47, %v1806_v47 }
 0x386   : > { %v1822_v14 = vrot.slane %v1806_v47, %v2236_v10  ;;  %v1780_v18 = vrot.slane %v1758_v40, %v2236_v10  ;;  %v1844_v38 = vrot.slane %v1766_v51, %v2246_v11  ;;  %v1788_v32 = vcombine.high %v1766_v51, %v1766_v51 }
 0x387   : > { %v1880_v45 = vrot.slane %v1829_v49, %v2246_v11  ;;  %v1839_v46 = vcombine.high %v1829_v49, %v1829_v49  ;;  %v1884_v15 = vrot.slane %v1837_v55, %v2246_v11  ;;  %v1836_v50 = vrot.slane %v1808_v57, %v2236_v10 }
 0x388   : > { %v1892_v29 = vrot.slane %v1822_v14, %v2246_v11  ;;  %v1848_v60 = vrot.slane %v1780_v18, %v2246_v11  ;;  %v1790_v3 = vcombine.high %v1780_v18, %v1780_v18  ;;  %v1759_v59 = vcombine.high %v1757_v25, %v1757_v25 }
 0x389   : > { %v1888_v9 = vrot.slane %v1839_v46, %v2246_v11  ;;  %v1896_v20 = vrot.slane %v1836_v50, %v2246_v11  ;;  %v1852_v43 = vrot.slane %v1788_v32, %v2246_v11  ;;  %v1773_v63 = vrot.slane %v1757_v25, %v2236_v10 }
 0x38a   : > { %v1856_v6 = vrot.slane %v1790_v3, %v2246_v11  ;;  %v1787_v39 = vrot.slane %v1759_v59, %v2236_v10  ;;  %v1840_v7 = vcombine.high %v1836_v50, %v1836_v50  ;;  %v1838_v4 = vcombine.high %v1822_v14, %v1822_v14 }
 0x38b   : > { %v1860_v37 = vrot.slane %v1773_v63, %v2246_v11  ;;  %v1789_v23 = vcombine.high %v1773_v63, %v1773_v63 }
 0x38c   : > { %v1864_v16 = vrot.slane %v1787_v39, %v2246_v11  ;;  %v1791_v36 = vcombine.high %v1787_v39, %v1787_v39  ;;  %v1904_v47 = vrot.slane %v1840_v7, %v2246_v11 }
 0x38d   : > { %v1868_v30 = vrot.slane %v1789_v23, %v2246_v11 }
 0x38e   : > { %v1872_v31 = vrot.slane %v1791_v36, %v2246_v11 }
 0x3c6   : > { %v1698_v13 = vpop.permute.xlu1 %1697  ;;  %v1691_v56 = vpop.permute.xlu0 %1690 }
 0x3c7   : > { %v1930_v21 = vmul.f32 %v1880_v45, %v1698_v13  ;;  %v1929_v2 = vmul.f32 %v1876_v54, %v1691_v56  ;;  %v1900_v54 = vrot.slane %v1838_v4, %v2246_v11 }
 0x3c9   : > { %1946 = vst.msk [vmem:[%s2648_s29 + $0x48] sm:$0x7f] %vm601_vm0, %v1930_v21  ;;  %1945 = vst.msk [vmem:[%s2648_s29 + $0x40] sm:$0x7f] %vm601_vm0, %v1929_v2 }
 0x3ca   : > { %v1712_v12 = vpop.permute.xlu1 %1711  ;;  %v1705_v52 = vpop.permute.xlu0 %1704 }
 0x3cb   : > { %v1932_v28 = vmul.f32 %v1888_v9, %v1712_v12  ;;  %v1931_v17 = vmul.f32 %v1884_v15, %v1705_v52 }
 0x3cd   : > { %1948 = vst.msk [vmem:[%s2648_s29 + $0x58] sm:$0x7f] %vm601_vm0, %v1932_v28  ;;  %1947 = vst.msk [vmem:[%s2648_s29 + $0x50] sm:$0x7f] %vm601_vm0, %v1931_v17 }
 0x3ce   : > { %v1726_v26 = vpop.permute.xlu1 %1725  ;;  %v1719_v19 = vpop.permute.xlu0 %1718 }
 0x3cf   : > { %v1934_v22 = vmul.f32 %v1896_v20, %v1726_v26  ;;  %v1933_v58 = vmul.f32 %v1892_v29, %v1719_v19 }
 0x3d1   : > { %1950 = vst.msk [vmem:[%s2648_s29 + $0x68] sm:$0x7f] %vm601_vm0, %v1934_v22  ;;  %1949 = vst.msk [vmem:[%s2648_s29 + $0x60] sm:$0x7f] %vm601_vm0, %v1933_v58 }
 0x3d2   : > { %v1642_v33 = vpop.permute.xlu1 %1641  ;;  %v1635_v1 = vpop.permute.xlu0 %1634 }
 0x3d3   : > { %v1922_v34 = vmul.f32 %v1848_v60, %v1642_v33  ;;  %v1921_v35 = vmul.f32 %v1844_v38, %v1635_v1 }
 0x3d5   : > { %1938 = vst.msk [vmem:[%s2648_s29 + $0x8] sm:$0x7f] %vm601_vm0, %v1922_v34  ;;  %1937 = vst.msk [vmem:[%s2648_s29] sm:$0x7f] %vm601_vm0, %v1921_v35 }
 0x3d6   : > { %v1656_v24 = vpop.permute.xlu1 %1655  ;;  %v1649_v62 = vpop.permute.xlu0 %1648 }
 0x3d7   : > { %v1924_v42 = vmul.f32 %v1856_v6, %v1656_v24  ;;  %v1923_v48 = vmul.f32 %v1852_v43, %v1649_v62 }
 0x3d9   : > { %1940 = vst.msk [vmem:[%s2648_s29 + $0x18] sm:$0x7f] %vm601_vm0, %v1924_v42  ;;  %1939 = vst.msk [vmem:[%s2648_s29 + $0x10] sm:$0x7f] %vm601_vm0, %v1923_v48 }
 0x3da   : > { %v1670_v41 = vpop.permute.xlu1 %1669  ;;  %v1663_v0 = vpop.permute.xlu0 %1662 }
 0x3db   : > { %v1926_v10 = vmul.f32 %v1864_v16, %v1670_v41  ;;  %v1925_v44 = vmul.f32 %v1860_v37, %v1663_v0 }
 0x3dd   : > { %1942 = vst.msk [vmem:[%s2648_s29 + $0x28] sm:$0x7f] %vm601_vm0, %v1926_v10  ;;  %1941 = vst.msk [vmem:[%s2648_s29 + $0x20] sm:$0x7f] %vm601_vm0, %v1925_v44 }
 0x3de   : > { %v1684_v27 = vpop.permute.xlu1 %1683  ;;  %v1677_v53 = vpop.permute.xlu0 %1676 }
 0x3df   : > { %v1928_v8 = vmul.f32 %v1872_v31, %v1684_v27  ;;  %v1927_v49 = vmul.f32 %v1868_v30, %v1677_v53 }
 0x3e1   : > { %1944 = vst.msk [vmem:[%s2648_s29 + $0x38] sm:$0x7f] %vm601_vm0, %v1928_v8  ;;  %1943 = vst.msk [vmem:[%s2648_s29 + $0x30] sm:$0x7f] %vm601_vm0, %v1927_v49 }
 0x3e2   : > { %v1740_v5 = vpop.permute.xlu1 %1739  ;;  %v1733_v45 = vpop.permute.xlu0 %1732 }
 0x3e3   : > { %v1936_v46 = vmul.f32 %v1904_v47, %v1740_v5  ;;  %v1935_v55 = vmul.f32 %v1900_v54, %v1733_v45 }
 0x3e5   : > { %1952 = vst.msk [vmem:[%s2648_s29 + $0x78] sm:$0x7f] %vm601_vm0, %v1936_v46  ;;  %1951 = vst.msk [vmem:[%s2648_s29 + $0x70] sm:$0x7f] %vm601_vm0, %v1935_v55 }
 0x3e6 PF: > { %s21_s17 = sadd.s32 1, %s2148_s17  }
 0x3e7   : > { %p18_p4 = scmp.ge.s32.totalorder %s21_s17, 4  }
 0x3e9   :  { %20 = sbr.rel (!%p18_p4) target bundleno = 1 (0x1), region = 94 }

</bundles_post_ra>
